<compile_context>
chip_gen: v7x
topology: tpu7x:2x2x1
jax: 0.10.0
libtpu: 0.0.40
codegen_flags: <defaults>
</compile_context>

<pallas_src>
import functools

import jax
import jax.numpy as jnp
from jax import lax
from jax.experimental import pallas as pl
from jax.experimental.pallas import tpu as pltpu

KH = KW = 3   # kernel_size=3
PAD = 1       # padding=1
LANE = 128    # lane-aligned halo size (must be >= W*PAD + PAD)


def _dsc_kernel(W, x_ref, wdw_ref, wpw_ref, mask_ref, out_ref, xpad_ref):
    # x_ref    : (1, Cin, H*W)             one batch element, channels-first, flat spatial
    # wdw_ref  : (Cin, KH*KW)              depthwise weights (f32, cast hoisted to wrapper)
    # wpw_ref  : (Cout, Cin)               pointwise weights (f32)
    # mask_ref : (2, Cin, H*W)             [0]=left-neighbour valid, [1]=right-neighbour valid
    # out_ref  : (1, Cout, H*W)            lane-dense output (NCHW after a free reshape)
    # xpad_ref : (Cin, LANE + H*W + LANE)  f32 scratch: zero halo + live image (lane-aligned)
    Cin = x_ref.shape[1]
    HW = x_ref.shape[2]

    # Zero the halo and copy the live image into the lane-aligned window (cast once).
    xpad_ref[...] = jnp.zeros_like(xpad_ref)
    xpad_ref[:, LANE:LANE + HW] = x_ref[0].astype(jnp.float32)

    wdw = wdw_ref[...]          # (Cin, 9)
    mask_l = mask_ref[0]        # (Cin, HW): 0.0 where w == 0
    mask_r = mask_ref[1]        # (Cin, HW): 0.0 where w == W-1

    # Depthwise 3x3 = 9 statically shifted lane slices of the padded row-major image (VPU).
    # Row shifts (dh) fall into the zero halo; column wrap-around is masked out.
    acc = jnp.zeros((Cin, HW), jnp.float32)
    for k in range(KH * KW):
        dh = k // KW - PAD
        dw = k % KW - PAD
        start = LANE + dh * W + dw                     # static Python int
        win = xpad_ref[:, start:start + HW]            # (Cin, HW)
        if dw < 0:
            win = win * mask_l
        elif dw > 0:
            win = win * mask_r
        acc = acc + win * wdw[:, k:k + 1]              # (Cin,1) broadcast along lanes

    # Pointwise 1x1 conv: (Cout,Cin) @ (Cin,H*W) on the MXU; store is lane-dense (H*W lanes).
    out = jnp.dot(wpw_ref[...], acc, preferred_element_type=jnp.float32)
    out_ref[0] = out.astype(out_ref.dtype)


def depthwise_separable_conv(x_nchw, w_dw, w_pw):
    """x_nchw: (N, Cin, H, W); w_dw: (Cin, 1, KH, KW); w_pw: (Cout, Cin, 1, 1)."""
    N, Cin, H, W = x_nchw.shape
    Cout = w_pw.shape[0]
    HW = H * W
    assert W * PAD + PAD <= LANE, "halo must fit inside the lane-aligned pad"

    # Glue is free / tiny: contiguous reshapes only — no transposes, no jnp.pad HBM pass.
    x_flat = x_nchw.reshape(N, Cin, HW)                               # (N, Cin, H*W)
    wdw = w_dw[:, 0].reshape(Cin, KH * KW).astype(jnp.float32)        # (Cin, 9)
    wpw = w_pw[:, :, 0, 0].astype(jnp.float32)                        # (Cout, Cin)

    # Column-wrap masks for the dw = -1 / +1 taps (computed once; grid-resident input).
    col = jnp.arange(HW, dtype=jnp.int32) % W
    mask = jnp.stack([col != 0, col != W - 1]).astype(jnp.float32)    # (2, HW)
    mask = jnp.broadcast_to(mask[:, None, :], (2, Cin, HW))           # (2, Cin, HW)

    # TODO(synk): for large H*W / channel counts, tile H (with a halo) and Cout into the
    # grid and re-derive the VMEM budget per generation (v7x: 64 MiB) instead of one whole
    # image per grid step.
    out_flat = pl.pallas_call(
        functools.partial(_dsc_kernel, W),
        out_shape=jax.ShapeDtypeStruct((N, Cout, HW), x_nchw.dtype),
        grid=(N,),
        in_specs=[
            pl.BlockSpec((1, Cin, HW), lambda n: (n, 0, 0)),
            pl.BlockSpec((Cin, KH * KW), lambda n: (0, 0)),
            pl.BlockSpec((Cout, Cin), lambda n: (0, 0)),
            pl.BlockSpec((2, Cin, HW), lambda n: (0, 0, 0)),
        ],
        out_specs=pl.BlockSpec((1, Cout, HW), lambda n: (n, 0, 0)),
        scratch_shapes=[pltpu.VMEM((Cin, LANE + HW + LANE), jnp.float32)],
        compiler_params=pltpu.CompilerParams(
            dimension_semantics=("parallel",)),   # N=2 -> both TCs on v7x; free on v5e/v6e
    )(x_flat, wdw, wpw, mask)

    # Output is already NCHW-ordered; reshape is a free contiguous view.
    return out_flat.reshape(N, Cout, H, W)


def _reference(x_nchw, w_dw, w_pw):
    # Pure-JAX reference (grouped conv + 1x1 conv), NCHW.
    dw = lax.conv_general_dilated(
        x_nchw, w_dw, window_strides=(1, 1), padding=((PAD, PAD), (PAD, PAD)),
        dimension_numbers=("NCHW", "OIHW", "NCHW"),
        feature_group_count=x_nchw.shape[1])
    pw = lax.conv_general_dilated(
        dw, w_pw, window_strides=(1, 1), padding="VALID",
        dimension_numbers=("NCHW", "OIHW", "NCHW"))
    return pw


if __name__ == "__main__":
    N, Cin, Cout, H, W = 2, 4, 8, 16, 16

    key = jax.random.PRNGKey(0)
    kx, kd, kp = jax.random.split(key, 3)
    x = jax.random.normal(kx, (N, Cin, H, W), jnp.float32)
    # PyTorch parameter shapes: depthwise (Cin,1,3,3), pointwise (Cout,Cin,1,1)
    w_dw = jax.random.normal(kd, (Cin, 1, KH, KW), jnp.float32) * 0.1
    w_pw = jax.random.normal(kp, (Cout, Cin, 1, 1), jnp.float32) * 0.1

    out = jax.block_until_ready(depthwise_separable_conv(x, w_dw, w_pw))
    ref = jax.block_until_ready(_reference(x, w_dw, w_pw))

    assert out.shape == (N, Cout, H, W)
    assert jnp.allclose(out, ref, atol=1e-4, rtol=1e-4)
    print("KERNEL_OK")
</pallas_src>

<mosaic_0001>
module attributes {stable_mosaic.version = 11 : i64} {
  func.func @_dsc_kernel(%arg0: i32, %arg1: memref<1x4x256xf32, #tpu.memory_space<vmem>>, %arg2: memref<4x9xf32, #tpu.memory_space<vmem>>, %arg3: memref<8x4xf32, #tpu.memory_space<vmem>>, %arg4: memref<2x4x256xf32, #tpu.memory_space<vmem>>, %arg5: memref<1x8x256xf32, #tpu.memory_space<vmem>>, %arg6: memref<4x512xf32, #tpu.memory_space<vmem>>) attributes {dimension_semantics = [#tpu.dimension_semantics<parallel>], iteration_bounds = array<i64: 2>, scalar_prefetch = 0 : i64, scratch_operands = 1 : i64, tpu.core_type = #tpu.core_type<tc>, window_params = [{transform_indices = @transform_0, window_bounds = array<i64: 1, 4, 256>}, {pipeline_mode = #tpu.pipeline_mode<synchronous>, transform_indices = @transform_1, window_bounds = array<i64: 4, 9>}, {pipeline_mode = #tpu.pipeline_mode<synchronous>, transform_indices = @transform_2, window_bounds = array<i64: 8, 4>}, {pipeline_mode = #tpu.pipeline_mode<synchronous>, transform_indices = @transform_3, window_bounds = array<i64: 2, 4, 256>}, {transform_indices = @transform_4, window_bounds = array<i64: 1, 8, 256>}]} {
    %cst = arith.constant 0.000000e+00 : f32
    %0 = vector.broadcast %cst : f32 to vector<4x512xf32>
    %c0 = arith.constant 0 : index
    %c0_0 = arith.constant 0 : index
    %1 = vector.load %arg6[%c0, %c0_0] : memref<4x512xf32, #tpu.memory_space<vmem>>, vector<4x512xf32>
    tpu.vector_store %arg6[%c0, %c0_0], %0 {strides = array<i32>} : memref<4x512xf32, #tpu.memory_space<vmem>>, vector<4x512xf32>,
    %c0_1 = arith.constant 0 : index
    %c0_2 = arith.constant 0 : index
    %c0_3 = arith.constant 0 : index
    %2 = vector.load %arg1[%c0_1, %c0_2, %c0_3] : memref<1x4x256xf32, #tpu.memory_space<vmem>>, vector<1x4x256xf32>
    %3 = vector.shape_cast %2 : vector<1x4x256xf32> to vector<4x256xf32>
    %c0_4 = arith.constant 0 : index
    %c128 = arith.constant 128 : index
    %4 = vector.load %arg6[%c0_4, %c128] : memref<4x512xf32, #tpu.memory_space<vmem>>, vector<4x256xf32>
    tpu.vector_store %arg6[%c0_4, %c128], %3 {strides = array<i32>} : memref<4x512xf32, #tpu.memory_space<vmem>>, vector<4x256xf32>,
    %c0_5 = arith.constant 0 : index
    %c0_6 = arith.constant 0 : index
    %5 = vector.load %arg2[%c0_5, %c0_6] : memref<4x9xf32, #tpu.memory_space<vmem>>, vector<4x9xf32>
    %c0_7 = arith.constant 0 : index
    %c0_8 = arith.constant 0 : index
    %c0_9 = arith.constant 0 : index
    %6 = vector.load %arg4[%c0_7, %c0_8, %c0_9] : memref<2x4x256xf32, #tpu.memory_space<vmem>>, vector<1x4x256xf32>
    %7 = vector.shape_cast %6 : vector<1x4x256xf32> to vector<4x256xf32>
    %c1 = arith.constant 1 : index
    %c0_10 = arith.constant 0 : index
    %c0_11 = arith.constant 0 : index
    %8 = vector.load %arg4[%c1, %c0_10, %c0_11] : memref<2x4x256xf32, #tpu.memory_space<vmem>>, vector<1x4x256xf32>
    %9 = vector.shape_cast %8 : vector<1x4x256xf32> to vector<4x256xf32>
    %cst_12 = arith.constant 0.000000e+00 : f32
    %10 = vector.broadcast %cst_12 : f32 to vector<4x256xf32>
    %c0_13 = arith.constant 0 : index
    %c111 = arith.constant 111 : index
    %11 = vector.load %arg6[%c0_13, %c111] : memref<4x512xf32, #tpu.memory_space<vmem>>, vector<4x256xf32>
    %12 = arith.mulf %11, %7 : vector<4x256xf32>
    %13 = vector.extract_strided_slice %5 {offsets = [0, 0], sizes = [4, 1], strides = [1, 1]} : vector<4x9xf32> to vector<4x1xf32>
    %14 = vector.broadcast %13 : vector<4x1xf32> to vector<4x256xf32>
    %15 = arith.mulf %12, %14 : vector<4x256xf32>
    %16 = arith.addf %10, %15 : vector<4x256xf32>
    %c0_14 = arith.constant 0 : index
    %c112 = arith.constant 112 : index
    %17 = vector.load %arg6[%c0_14, %c112] : memref<4x512xf32, #tpu.memory_space<vmem>>, vector<4x256xf32>
    %18 = vector.extract_strided_slice %5 {offsets = [0, 1], sizes = [4, 1], strides = [1, 1]} : vector<4x9xf32> to vector<4x1xf32>
    %19 = vector.broadcast %18 : vector<4x1xf32> to vector<4x256xf32>
    %20 = arith.mulf %17, %19 : vector<4x256xf32>
    %21 = arith.addf %16, %20 : vector<4x256xf32>
    %c0_15 = arith.constant 0 : index
    %c113 = arith.constant 113 : index
    %22 = vector.load %arg6[%c0_15, %c113] : memref<4x512xf32, #tpu.memory_space<vmem>>, vector<4x256xf32>
    %23 = arith.mulf %22, %9 : vector<4x256xf32>
    %24 = vector.extract_strided_slice %5 {offsets = [0, 2], sizes = [4, 1], strides = [1, 1]} : vector<4x9xf32> to vector<4x1xf32>
    %25 = vector.broadcast %24 : vector<4x1xf32> to vector<4x256xf32>
    %26 = arith.mulf %23, %25 : vector<4x256xf32>
    %27 = arith.addf %21, %26 : vector<4x256xf32>
    %c0_16 = arith.constant 0 : index
    %c127 = arith.constant 127 : index
    %28 = vector.load %arg6[%c0_16, %c127] : memref<4x512xf32, #tpu.memory_space<vmem>>, vector<4x256xf32>
    %29 = arith.mulf %28, %7 : vector<4x256xf32>
    %30 = vector.extract_strided_slice %5 {offsets = [0, 3], sizes = [4, 1], strides = [1, 1]} : vector<4x9xf32> to vector<4x1xf32>
    %31 = vector.broadcast %30 : vector<4x1xf32> to vector<4x256xf32>
    %32 = arith.mulf %29, %31 : vector<4x256xf32>
    %33 = arith.addf %27, %32 : vector<4x256xf32>
    %c0_17 = arith.constant 0 : index
    %c128_18 = arith.constant 128 : index
    %34 = vector.load %arg6[%c0_17, %c128_18] : memref<4x512xf32, #tpu.memory_space<vmem>>, vector<4x256xf32>
    %35 = vector.extract_strided_slice %5 {offsets = [0, 4], sizes = [4, 1], strides = [1, 1]} : vector<4x9xf32> to vector<4x1xf32>
    %36 = vector.broadcast %35 : vector<4x1xf32> to vector<4x256xf32>
    %37 = arith.mulf %34, %36 : vector<4x256xf32>
    %38 = arith.addf %33, %37 : vector<4x256xf32>
    %c0_19 = arith.constant 0 : index
    %c129 = arith.constant 129 : index
    %39 = vector.load %arg6[%c0_19, %c129] : memref<4x512xf32, #tpu.memory_space<vmem>>, vector<4x256xf32>
    %40 = arith.mulf %39, %9 : vector<4x256xf32>
    %41 = vector.extract_strided_slice %5 {offsets = [0, 5], sizes = [4, 1], strides = [1, 1]} : vector<4x9xf32> to vector<4x1xf32>
    %42 = vector.broadcast %41 : vector<4x1xf32> to vector<4x256xf32>
    %43 = arith.mulf %40, %42 : vector<4x256xf32>
    %44 = arith.addf %38, %43 : vector<4x256xf32>
    %c0_20 = arith.constant 0 : index
    %c143 = arith.constant 143 : index
    %45 = vector.load %arg6[%c0_20, %c143] : memref<4x512xf32, #tpu.memory_space<vmem>>, vector<4x256xf32>
    %46 = arith.mulf %45, %7 : vector<4x256xf32>
    %47 = vector.extract_strided_slice %5 {offsets = [0, 6], sizes = [4, 1], strides = [1, 1]} : vector<4x9xf32> to vector<4x1xf32>
    %48 = vector.broadcast %47 : vector<4x1xf32> to vector<4x256xf32>
    %49 = arith.mulf %46, %48 : vector<4x256xf32>
    %50 = arith.addf %44, %49 : vector<4x256xf32>
    %c0_21 = arith.constant 0 : index
    %c144 = arith.constant 144 : index
    %51 = vector.load %arg6[%c0_21, %c144] : memref<4x512xf32, #tpu.memory_space<vmem>>, vector<4x256xf32>
    %52 = vector.extract_strided_slice %5 {offsets = [0, 7], sizes = [4, 1], strides = [1, 1]} : vector<4x9xf32> to vector<4x1xf32>
    %53 = vector.broadcast %52 : vector<4x1xf32> to vector<4x256xf32>
    %54 = arith.mulf %51, %53 : vector<4x256xf32>
    %55 = arith.addf %50, %54 : vector<4x256xf32>
    %c0_22 = arith.constant 0 : index
    %c145 = arith.constant 145 : index
    %56 = vector.load %arg6[%c0_22, %c145] : memref<4x512xf32, #tpu.memory_space<vmem>>, vector<4x256xf32>
    %57 = arith.mulf %56, %9 : vector<4x256xf32>
    %58 = vector.extract_strided_slice %5 {offsets = [0, 8], sizes = [4, 1], strides = [1, 1]} : vector<4x9xf32> to vector<4x1xf32>
    %59 = vector.broadcast %58 : vector<4x1xf32> to vector<4x256xf32>
    %60 = arith.mulf %57, %59 : vector<4x256xf32>
    %61 = arith.addf %55, %60 : vector<4x256xf32>
    %c0_23 = arith.constant 0 : index
    %c0_24 = arith.constant 0 : index
    %62 = vector.load %arg3[%c0_23, %c0_24] : memref<8x4xf32, #tpu.memory_space<vmem>>, vector<8x4xf32>
    %cst_25 = arith.constant dense<0.000000e+00> : vector<8x256xf32>
    %63 = tpu.matmul %62, %61, %cst_25 {dimension_numbers = #tpu.dot_dimension_numbers<[1], [0], [0], [1], [0, 0, 1, 1], [], []>} : vector<8x4xf32>, vector<4x256xf32>, vector<8x256xf32> -> vector<8x256xf32>
    %c0_26 = arith.constant 0 : index
    %c0_27 = arith.constant 0 : index
    %c0_28 = arith.constant 0 : index
    %64 = vector.load %arg5[%c0_26, %c0_27, %c0_28] : memref<1x8x256xf32, #tpu.memory_space<vmem>>, vector<1x8x256xf32>
    %65 = vector.shape_cast %64 : vector<1x8x256xf32> to vector<8x256xf32>
    %66 = vector.shape_cast %63 : vector<8x256xf32> to vector<1x8x256xf32>
    tpu.vector_store %arg5[%c0_26, %c0_27, %c0_28], %66 {strides = array<i32>} : memref<1x8x256xf32, #tpu.memory_space<vmem>>, vector<1x8x256xf32>,
    return
  }
  func.func @transform_0(%arg0: i32) -> (i32, i32, i32) {
    %c0_i32 = arith.constant 0 : i32
    %c0_i32_0 = arith.constant 0 : i32
    %c0_i32_1 = arith.constant 0 : i32
    return %arg0, %c0_i32, %c0_i32_0 : i32, i32, i32
  }
  func.func @transform_1(%arg0: i32) -> (i32, i32) {
    %c0_i32 = arith.constant 0 : i32
    %c0_i32_0 = arith.constant 0 : i32
    %c0_i32_1 = arith.constant 0 : i32
    return %c0_i32, %c0_i32_0 : i32, i32
  }
  func.func @transform_2(%arg0: i32) -> (i32, i32) {
    %c0_i32 = arith.constant 0 : i32
    %c0_i32_0 = arith.constant 0 : i32
    %c0_i32_1 = arith.constant 0 : i32
    return %c0_i32, %c0_i32_0 : i32, i32
  }
  func.func @transform_3(%arg0: i32) -> (i32, i32, i32) {
    %c0_i32 = arith.constant 0 : i32
    %c0_i32_0 = arith.constant 0 : i32
    %c0_i32_1 = arith.constant 0 : i32
    %c0_i32_2 = arith.constant 0 : i32
    return %c0_i32, %c0_i32_0, %c0_i32_1 : i32, i32, i32
  }
  func.func @transform_4(%arg0: i32) -> (i32, i32, i32) {
    %c0_i32 = arith.constant 0 : i32
    %c0_i32_0 = arith.constant 0 : i32
    %c0_i32_1 = arith.constant 0 : i32
    return %arg0, %c0_i32, %c0_i32_0 : i32, i32, i32
  }
}

</mosaic_0001>

<bundles_post_ra>
// kernel: tpu_custom_call.1
= control target key start
LH: loop header
LB: loop body
LE: loop exit
PB: predicated region body
PF: predicated region fallthrough
CT: control target
= control target key end

     0   :  { %9 = vsyncpa [#allocation4], 0  ;;  %s1169_s0 = inlined_call_operand.hbm [shape: f32[2,4,256], index: 0, kind: input, shape index: {}]   ;;  %s1170_s1 = inlined_call_operand.vmem [shape: f32[4,9], index: 1, kind: input, shape index: {}]   ;;  %s1171_s2 = inlined_call_operand.vmem [shape: f32[8,4], index: 2, kind: input, shape index: {}]   ;;  %s1172_s3 = inlined_call_operand.vmem [shape: f32[2,4,256], index: 3, kind: input, shape index: {}]   ;;  %s1173_s4 = inlined_call_operand.hbm [shape: f32[2,8,256], index: 4, kind: output, shape index: {}]  }
   0x1   :  { %11 = vsyncpa [#allocation4 + $0x1], 0 }
   0x2   :  { %12 = vsyncpa [#allocation5], 0 }
   0x3   :  { %14 = vsyncpa [#allocation5 + $0x1], 0  ;;  %s937_s15 = smov 0   ;;  %s939_s16 = smov 0  }
   0x4   :  { %s941_s17 = smov 0   ;;  %s943_s18 = smov 0  }
   0x5 LB: > { %s958_s19 = sadd.s32 4294967295, %s885_s18   ;;  %s690_s20 = sadd.s32 4294967294, %s885_s18   ;;  %s885_s18 = sphi %s943_s18, %s1188_s18   ;;  %s881_s17 = sphi %s941_s17, %s1187_s17   ;;  %s877_s16 = sphi %s939_s16, %s1186_s16   ;;  %s873_s15 = sphi %s937_s15, %s1185_s15  }
   0x6   : > { %s962_s21 = sadd.s32 1, %s885_s18   ;;  %s27_s22 = sadd.s32 1, %s881_s17 }
   0x7   : > { %s24_s23 = ssub.s32 %s885_s18, %s962_s21  ;;  %p34_p0 = scmp.ne.s32.totalorder %s881_s17, %s877_s16 }
   0x8   : > { %p25_p1 = scmp.eq.s32.totalorder %s24_s23, 0  ;;  %p35_p2 = scmp.eq.s32.totalorder %s885_s18, 0 }
   0x9   : > { %p40_p3 = scmp.ne.s32.totalorder %s877_s16, %s873_s15  ;;  %p41_p4 = scmp.eq.s32.totalorder %s958_s19, 0 }
   0xa   : > { %s974_s24 = scalar_select %p25_p1, %s881_s17, %s27_s22  }
   0xb   : > { %p976_p5 = por %p35_p2, %p34_p0  ;;  %p980_p6 = por %p41_p4, %p40_p3 }
   0xc   : > { %p127_p7 = scmp.eq.s32.totalorder %s958_s19, 1  ;;  %p133_p8 = scmp.eq.s32.totalorder %s690_s20, 1 }
   0xd   : > { %p722_p10 = scmp.lt.s32.totalorder %s885_s18, 2  ;;  %s162_s29 = sand.u32 1, %s881_s17  }
   0xe   : > { %p987_p11 = por %p127_p7, %p34_p0  ;;  %p991_p12 = por %p133_p8, %p40_p3 }
   0xf   : > { %s708_s30 = sshll.u32 %s885_s18, 7  ;;  %s693_s5 = sshll.u32 %s162_s29, 3 }
  0x10   : > { %s1177_s27 = scalar_select %p987_p11, 1, 0 }
  0x11   : > { %s1178_s28 = scalar_select %p991_p12, 1, 0 }
  0x12   : > { %s1000_s8 = scalar_lea.hbm %s1169_s0, %s708_s30  ;;  %s166_s9 = scalar_lea.vmem [#allocation3], %s693_s5 }
  0x13   : > { %s174_s10 = sshll.u32 %s166_s9, 4  ;;  %p1004_p13 = pnand %p722_p10, %p976_p5  ;;  %s1008_s10 = int_to_ptr.vmem [resolvable:$true] %s174_s10 }
  0x14   : > { %s163_s12 = scalar_lea.sflag [#allocation4], %s162_s29  ;;  %s789_s13 = scalar_lea.hbm %s1000_s8, 128 }
  0x15   : > { %p790_p2 = scmp.ne.s32.totalorder %s1000_s8, %s789_s13  ;;  %p791_p3 = pneg %p1004_p13 }
  0x16   : > { %s794_s22 = scalar_lea.hbm %s1169_s0, 256  ;;  %p795_p5 = scmp.lt.u32.totalorder %s1000_s8, %s1169_s0 }
  0x17   : > { %p792_p4 = pnand %p791_p3, %p790_p2  ;;  %p796_p8 = scmp.lt.u32.totalorder %s794_s22, %s789_s13 }
  0x18   : > { %p798_p9 = scmp.lt.u32.totalorder %s789_s13, %s1000_s8 }
  0x19   : > { %p793_p7 = pneg %p792_p4  ;;  %p797_p10 = por %p796_p8, %p795_p5 }
  0x1b   : > { %p799_p0 = por %p798_p9, %p797_p10 }
  0x1d   : > { %p800_p1 = pnand %p799_p0, %p793_p7 }
  0x1f   : > { %803 = shalt.err (!%p800_p1)
}
  0x20   : > { %s804_s29 = scalar_lea.vmem %s1008_s10, 128  ;;  %s887_s30 = smov [#allocation3]  }
  0x21   : > { %p805_p2 = scmp.ne.s32.totalorder %s1008_s10, %s804_s29  ;;  %s809_s5 = sshll.u32 %s887_s30, 4  ;;  %s810_s5 = int_to_ptr.vmem [resolvable:$false] %s809_s5 }
  0x22   : > { %s811_s6 = scalar_lea.vmem %s810_s5, 256  ;;  %p812_p11 = scmp.lt.s32.totalorder %s1008_s10, %s810_s5 }
  0x23   : > { %p807_p4 = pnand %p805_p2, %p791_p3  ;;  %p813_p5 = scmp.lt.s32.totalorder %s811_s6, %s804_s29 }
  0x25   : > { %p808_p12 = pneg %p807_p4  ;;  %p814_p8 = por %p813_p5, %p812_p11 }
  0x27   : > { %p815_p9 = pnand %p814_p8, %p808_p12 }
  0x29   : > { %818 = shalt.err (!%p815_p9)
}
  0x2a   : > { %717 = dma.hbm_to_vmem [thread:$0]  (!%p1004_p13), %s1000_s8, 128, %s1008_s10, %s163_s12  }
  0x2b   : > { %p1180_p0 = scmp.lt.s32.totalorder %s885_s18, 3  ;;  %p1181_p1 = scmp.ge.s32.totalorder %s885_s18, 1 }
  0x2d   : > { %p180_p3 = pnand %p1181_p1, %p1180_p0 }
  0x2e   : > { %s1042_s7 = sand.u32 (!%p180_p3), 1, %s877_s16  }
  0x2f   : > { %183 = sbr.rel (%p180_p3) target bundleno = 688 (0x2b0), region = 36  ;;  %s697_s9 = sshll.u32 (!%p180_p3), %s1042_s7, 3 }
  0x30   : > { %s186_s13 = scalar_lea.sflag (!%p180_p3), [#allocation4], %s1042_s7  ;;  %s189_s14 = scalar_lea.vmem (!%p180_p3), [#allocation3], %s697_s9 }
  0x36   : > { %864 = dma.done.wait (%p980_p6), %s186_s13, 128  }
  0x37   : > { %866 = vsyncadd (%p980_p6), %s186_s13, 4294967168  ;;  %v888_v0 = vmov 3   ;;  %v889_v1 = vmov 1   ;;  %v890_v2 = vmov 0.0   ;;  %v218_v3 = vld [vmem:[%s1170_s1] sm:$0xf]  ;;  %v241_v16 = vlaneseq }
  0x38   : > { %781 = vset.pattern.permute.xlu1 %v888_v0  ;;  %779 = vset.pattern.permute.xlu0 %v889_v1  ;;  %214 = vst [vmem:[#allocation2] sm:$0xff] %v890_v2  ;;  %215 = vst [vmem:[#allocation2 + $0x8] sm:$0xff] %v890_v2  ;;  %v1053_v4 = vld [vmem:[%s189_s14] sm:$0xff]  ;;  %v699_v5 = vld [vmem:[%s1172_s3 + $0x8] sm:$0xff]  ;;  %s891_s26 = smov 113   ;;  %v892_v6 = vmov 2  }
  0x39   : > { %596 = vmatprep.mubr.f32.mxu0 %v890_v2  ;;  %326 = vperm.xlu1 %781, %v218_v3   ;;  %217 = vst [vmem:[#allocation2 + $0x4] sm:$0xff] %v1053_v4  ;;  %v893_v7 = vmov 4   ;;  %v219_v8 = vld [vmem:[%s1172_s3] sm:$0xff]  ;;  %s894_s23 = smov 127   ;;  %v895_v9 = vmov 6   ;;  %v896_v10 = vmov 5  }
  0x3a   : > { %251 = vperm.xlu0 %779, %v218_v3   ;;  %s897_s25 = smov 1   ;;  %s898_s29 = smov 15   ;;  %v899_v11 = vmov 7   ;;  %v900_v12 = vmov 8   ;;  %v903_v13 = vmov 0   ;;  %v242_v18 = vshrl.u32 %v241_v16, 7 }
  0x3b   : > { %s901_s30 = smov 17   ;;  %s902_s5 = smov 111   ;;  %v904_v14 = vmov 839922192   ;;  %vm283_vm0 = vcmask 924672   ;;  %vm273_vm1 = vcmask 1039360  }
  0x3c   : > { %v239_v15 = vunpack.c.l.s4 %v904_v14  ;;  %s905_s6 = smov 126   ;;  %s906_s9 = smov 112   ;;  %vm380_vm2 = vcmask 7168   ;;  %vm416_vm3 = vcmask 121856   ;;  %vm479_vm4 = vcmask 138240  }
  0x3d   : > { %280 = vrot.lane.b32.xlu1 %v699_v5, %s891_s26  ;;  %s907_s13 = smov 110   ;;  %s908_s14 = smov 96   ;;  %vm228_vm5 = vcmask 908288   ;;  %vm271_vm6 = vcmask 1043456   ;;  %vm311_vm7 = vcmask 1031168   ;;  %vm347_vm8 = vcmask 916480  }
  0x3e   : > { %780 = vset.pattern.permute.xlu0 %v892_v6  ;;  %782 = vset.pattern.permute.xlu1 %v893_v7  ;;  %v240_v17 = vunpack.c.0.s8 %v239_v15  ;;  %s909_s8 = smov 95   ;;  %s910_s10 = smov 94   ;;  %vm406_vm9 = vcmask 900096   ;;  %vm442_vm10 = vcmask 785408   ;;  %vm469_vm11 = vcmask 777216  }
  0x3f   : > { %290 = vperm.xlu0 %780, %v218_v3   ;;  %v376_v53 = vld [vmem:[#allocation2 + $0xc] sm:$0xf]  ;;  %vm505_vm12 = vcmask 769024   ;;  %vm524_vm13 = vcmask 31744   ;;  %s698_s26 = sshll.u32 %s1042_s7, 4  ;;  %p1182_p11 = scmp.ne.s32.totalorder %s1177_s27, 0 }
  0x40   : > { %v1065_v19 = vsub.s32 %v240_v17, %v242_v18  ;;  %v1067_v22 = vld [vmem:[#allocation2] sm:$0xff]  ;;  %v1069_v23 = vld [vmem:[#allocation2 + $0x8] sm:$0xf]  ;;  %s213_s20 = scalar_lea.vmem [#allocation6], %s698_s26 }
  0x41   : > { %355 = vperm.xlu1 %782, %v218_v3   ;;  %s620_s22 = sshll.u32 %s213_s20, 4  ;;  %s1122_s22 = int_to_ptr.vmem [resolvable:$true] %s620_s22 }
  0x43   : > { %317 = vrot.lane.b32.xlu0 %v219_v8, %s894_s23 }
  0x44   : > { %784 = vset.pattern.permute.xlu0 %v895_v9 }
  0x45   : > { %783 = vset.pattern.permute.xlu1 %v896_v10 }
  0x46   : > { %387 = vperm.xlu1 %783, %v218_v3  }
  0x47   : > { %423 = vperm.xlu0 %784, %v218_v3  }
  0x4a   : > { %377 = vrot.lane.b32.xlu1 %v699_v5, %s897_s25 }
  0x4b   : > { %413 = vrot.lane.b32.xlu0 %v219_v8, %s898_s29  ;;  %785 = vset.pattern.permute.xlu1 %v899_v11 }
  0x4c   : > { %788 = vset.pattern.permute.xlu0 %v900_v12 }
  0x4e   : > { %450 = vperm.xlu1 %785, %v218_v3  }
  0x4f   : > { %476 = vrot.lane.b32.xlu0 %v699_v5, %s901_s30 }
  0x52   : > { %786 = vset.pattern.permute.xlu1 %v900_v12 }
  0x53   : > { %225 = vrot.lane.b32.xlu0 %v219_v8, %s902_s5  ;;  %486 = vperm.xlu1 %786, %v218_v3  }
  0x57   : > { %787 = vset.pattern.permute.xlu1 %v903_v13 }
  0x58   : > { %236 = vperm.xlu1 %787, %v218_v3  }
  0xb8   : > { %v327_v20 = vpop.permute.xlu1 %326 }
  0xb9   : > { %v252_v21 = vpop.permute.xlu0 %251  ;;  %v334_v39 = vrot.slane %v327_v20, %v1065_v19 }
  0xba   : > { %v259_v24 = vrot.slane %v252_v21, %v1065_v19 }
  0xbc   : > { %v261_v25 = vmul.f32 %v259_v24, %v1067_v22  ;;  %v262_v26 = vmul.f32 %v259_v24, %v1069_v23  ;;  %v281_v27 = vpop.permute.xlu1 %280 }
  0xbd   : > { %v282_v28 = vrot.slane %v281_v27, 4 }
  0xbe   : > { %v291_v29 = vpop.permute.xlu0 %290  ;;  %267 = vrot.lane.b32.xlu0 %v262_v26, %s894_s23  ;;  %265 = vrot.lane.b32.xlu1 %v261_v25, %s894_s23  ;;  %s709_s23 = sshll.u32 %s958_s19, 8  ;;  %s911_s19 = smov [#allocation6]  }
  0xbf   : > { %v298_v30 = vrot.slane %v291_v29, %v1065_v19  ;;  %v284_v31 = vsel %vm283_vm0, %v282_v28, %v281_v27  ;;  %v288_v32 = vmul.f32 %v282_v28, %v1069_v23 }
  0xc0   : > { %v287_v33 = vmul.f32 %v284_v31, %v1067_v22  ;;  %v356_v34 = vpop.permute.xlu1 %355 }
  0xc1   : > { %v301_v35 = vmul.f32 %v298_v30, %v288_v32  ;;  %v363_v46 = vrot.slane %v356_v34, %v1065_v19 }
  0xc2   : > { %v318_v36 = vpop.permute.xlu0 %317  ;;  %v300_v37 = vmul.f32 %v298_v30, %v287_v33 }
  0xc3   : > { %v319_v38 = vrot.slane %v318_v36, 4  ;;  %306 = vrot.lane.b32.xlu0 %v301_v35, %s905_s6  ;;  %v365_v52 = vmul.f32 %v363_v46, %v1053_v4 }
  0xc4   : > { %304 = vrot.lane.b32.xlu1 %v300_v37, %s905_s6  ;;  %s819_s6 = scalar_lea.vmem %s1122_s22, 256 }
  0xc5   : > { %v320_v40 = vsel %vm273_vm1, %v319_v38, %v318_v36  ;;  %v324_v41 = vmul.f32 %v319_v38, %v1069_v23  ;;  %v388_v43 = vpop.permute.xlu1 %387  ;;  %p820_p6 = scmp.ne.s32.totalorder %s1122_s22, %s819_s6 }
  0xc6   : > { %v323_v42 = vmul.f32 %v320_v40, %v1067_v22  ;;  %v424_v44 = vpop.permute.xlu0 %423  ;;  %v395_v56 = vrot.slane %v388_v43, %v1065_v19 }
  0xc7   : > { %v337_v45 = vmul.f32 %v334_v39, %v324_v41  ;;  %v431_v57 = vrot.slane %v424_v44, %v1065_v19  ;;  %p821_p12 = pnand %p820_p6, %p1182_p11 }
  0xc8   : > { %v336_v47 = vmul.f32 %v334_v39, %v323_v42 }
  0xc9   : > { %342 = vrot.lane.b32.xlu0 %v337_v45, %s906_s9  ;;  %v378_v48 = vpop.permute.xlu1 %377  ;;  %p822_p13 = pneg %p821_p12 }
  0xca   : > { %v414_v49 = vpop.permute.xlu0 %413  ;;  %340 = vrot.lane.b32.xlu1 %v336_v47, %s906_s9  ;;  %v379_v50 = vrot.slane %v378_v48, 4  ;;  %s823_s9 = sshll.u32 %s911_s19, 4  ;;  %s824_s9 = int_to_ptr.vmem [resolvable:$false] %s823_s9 }
  0xcb   : > { %v415_v51 = vrot.slane %v414_v49, 4  ;;  %p826_p7 = scmp.lt.s32.totalorder %s1122_s22, %s824_s9 }
  0xcc   : > { %v381_v54 = vsel %vm380_vm2, %v379_v50, %v378_v48  ;;  %v385_v0 = vmul.f32 %v379_v50, %v376_v53 }
  0xcd   : > { %v417_v55 = vsel %vm416_vm3, %v415_v51, %v414_v49  ;;  %v384_v58 = vmul.f32 %v381_v54, %v1053_v4  ;;  %v451_v60 = vpop.permute.xlu1 %450  ;;  %v421_v9 = vmul.f32 %v415_v51, %v376_v53 }
  0xce   : > { %v420_v59 = vmul.f32 %v417_v55, %v1053_v4  ;;  %367 = vrot.lane.b32.xlu1 %v365_v52, %s902_s5  ;;  %v477_v61 = vpop.permute.xlu0 %476  ;;  %v458_v62 = vrot.slane %v451_v60, %v1065_v19  ;;  %v398_v12 = vmul.f32 %v395_v56, %v385_v0  ;;  %s606_s5 = scalar_lea.sflag [#allocation5], %s1042_s7 }
  0xcf   : > { %v478_v63 = vrot.slane %v477_v61, 4  ;;  %v397_v1 = vmul.f32 %v395_v56, %v384_v58  ;;  %v434_v18 = vmul.f32 %v431_v57, %v421_v9 }
  0xd0   : > { %v433_v2 = vmul.f32 %v431_v57, %v420_v59  ;;  %v460_v5 = vmul.f32 %v458_v62, %v1053_v4  ;;  %v461_v25 = vmul.f32 %v458_v62, %v376_v53 }
  0xd1   : > { %v480_v3 = vsel %vm479_vm4, %v478_v63, %v477_v61  ;;  %401 = vrot.lane.b32.xlu0 %v397_v1, %s907_s13  ;;  %v484_v16 = vmul.f32 %v478_v63, %v376_v53 }
  0xd2   : > { %437 = vrot.lane.b32.xlu1 %v433_v2, %s908_s14  ;;  %v226_v6 = vpop.permute.xlu0 %225  ;;  %v487_v7 = vpop.permute.xlu1 %486  ;;  %v483_v10 = vmul.f32 %v480_v3, %v1053_v4 }
  0xd3   : > { %v227_v8 = vrot.slane %v226_v6, 4  ;;  %v494_v11 = vrot.slane %v487_v7, %v1065_v19 }
  0xd5   : > { %v229_v13 = vsel %vm228_vm5, %v227_v8, %v226_v6  ;;  %403 = vrot.lane.b32.xlu0 %v398_v12, %s907_s13  ;;  %v233_v15 = vmul.f32 %v227_v8, %v1069_v23  ;;  %v496_v17 = vmul.f32 %v494_v11, %v483_v10  ;;  %v497_v26 = vmul.f32 %v494_v11, %v484_v16  ;;  %s825_s13 = scalar_lea.vmem %s824_s9, 512 }
  0xd6   : > { %464 = vrot.lane.b32.xlu1 %v460_v5, %s909_s8  ;;  %v232_v14 = vmul.f32 %v229_v13, %v1067_v22  ;;  %p827_p10 = scmp.lt.s32.totalorder %s825_s13, %s819_s6 }
  0xd7   : > { %v237_v20 = vpop.permute.xlu1 %236 }
  0xd8   : > { %v244_v21 = vrot.slane %v237_v20, %v1065_v19  ;;  %p828_p2 = por %p827_p10, %p826_p7 }
  0xd9   : > { %439 = vrot.lane.b32.xlu0 %v434_v18, %s908_s14 }
  0xda   : > { %500 = vrot.lane.b32.xlu1 %v496_v17, %s910_s10  ;;  %v246_v4 = vmul.f32 %v244_v21, %v232_v14  ;;  %v247_v24 = vmul.f32 %v244_v21, %v233_v15  ;;  %p829_p4 = pnand %p828_p2, %p822_p13 }
  0xdd   : > { %466 = vrot.lane.b32.xlu0 %v461_v25, %s909_s8  ;;  %v512_v25 = vld [vmem:[%s1171_s2] sm:$0xff] }
  0xde   : > { %502 = vrot.lane.b32.xlu1 %v497_v26, %s910_s10 }
 0x130   : > { %v268_v27 = vpop.permute.xlu0 %267  ;;  %v266_v28 = vpop.permute.xlu1 %265 }
 0x131   : > { %v270_v22 = vrot.slane %v268_v27, 4  ;;  %v269_v29 = vrot.slane %v266_v28, 4  ;;  %v278_v52 = vadd.f32 %v268_v27, %v247_v24 }
 0x133   : > { %v272_v32 = vsel %vm271_vm6, %v269_v29, %v270_v22 }
 0x134   : > { %v274_v34 = vsel %vm273_vm1, %v266_v28, %v272_v32 }
 0x135   : > { %v307_v23 = vpop.permute.xlu0 %306  ;;  %v277_v40 = vadd.f32 %v274_v34, %v246_v4 }
 0x136   : > { %v309_v30 = vrot.slane %v307_v23, 4  ;;  %v305_v31 = vpop.permute.xlu1 %304  ;;  %v316_v55 = vadd.f32 %v307_v23, %v278_v52 }
 0x137   : > { %v308_v19 = vrot.slane %v305_v31, 4 }
 0x139   : > { %v310_v33 = vsel %vm271_vm6, %v308_v19, %v309_v30 }
 0x13a   : > { %v312_v38 = vsel %vm311_vm7, %v305_v31, %v310_v33 }
 0x13b   : > { %v343_v35 = vpop.permute.xlu0 %342  ;;  %v315_v42 = vadd.f32 %v312_v38, %v277_v40 }
 0x13c   : > { %v345_v36 = vrot.slane %v343_v35, 4  ;;  %v341_v37 = vpop.permute.xlu1 %340  ;;  %v352_v61 = vadd.f32 %v343_v35, %v316_v55 }
 0x13d   : > { %v344_v39 = vrot.slane %v341_v37, 4 }
 0x13f   : > { %v346_v41 = vsel %vm271_vm6, %v344_v39, %v345_v36 }
 0x140   : > { %v348_v43 = vsel %vm347_vm8, %v341_v37, %v346_v41  ;;  %v368_v44 = vpop.permute.xlu1 %367 }
 0x141   : > { %v369_v45 = vrot.slane %v368_v44, 4  ;;  %v351_v46 = vadd.f32 %v348_v43, %v315_v42 }
 0x143   : > { %v370_v47 = vsel %vm228_vm5, %v369_v45, %v368_v44  ;;  %v402_v48 = vpop.permute.xlu0 %401  ;;  %v374_v1 = vadd.f32 %v369_v45, %v352_v61 }
 0x144   : > { %v438_v49 = vpop.permute.xlu1 %437  ;;  %v405_v50 = vrot.slane %v402_v48, 4  ;;  %v373_v53 = vadd.f32 %v370_v47, %v351_v46 }
 0x145   : > { %v441_v51 = vrot.slane %v438_v49, 4 }
 0x146   : > { %v407_v54 = vsel %vm406_vm9, %v405_v50, %v402_v48 }
 0x147   : > { %v411_v56 = vadd.f32 %v407_v54, %v373_v53  ;;  %v404_v57 = vpop.permute.xlu0 %403  ;;  %v443_v59 = vsel %vm442_vm10, %v441_v51, %v438_v49 }
 0x148   : > { %v465_v58 = vpop.permute.xlu1 %464  ;;  %v408_v63 = vsel %vm406_vm9, %v405_v50, %v404_v57 }
 0x149   : > { %v468_v60 = vrot.slane %v465_v58, 4  ;;  %v447_v62 = vadd.f32 %v443_v59, %v411_v56  ;;  %v412_v7 = vadd.f32 %v408_v63, %v374_v1 }
 0x14b   : > { %v470_v0 = vsel %vm469_vm11, %v468_v60, %v465_v58  ;;  %v440_v2 = vpop.permute.xlu0 %439 }
 0x14c   : > { %v501_v3 = vpop.permute.xlu1 %500  ;;  %v444_v5 = vsel %vm442_vm10, %v441_v51, %v440_v2  ;;  %v474_v8 = vadd.f32 %v470_v0, %v447_v62 }
 0x14d   : > { %v504_v6 = vrot.slane %v501_v3, 4  ;;  %v448_v10 = vadd.f32 %v444_v5, %v412_v7 }
 0x14f   : > { %v506_v9 = vsel %vm505_vm12, %v504_v6, %v501_v3  ;;  %v467_v12 = vpop.permute.xlu0 %466 }
 0x150   : > { %v510_v11 = vadd.f32 %v506_v9, %v474_v8  ;;  %v503_v13 = vpop.permute.xlu1 %502  ;;  %v471_v14 = vsel %vm469_vm11, %v468_v60, %v467_v12 }
 0x151   : > { %v475_v15 = vadd.f32 %v471_v14, %v448_v10  ;;  %v507_v17 = vsel %vm505_vm12, %v504_v6, %v503_v13 }
 0x152   : > { %v515_v16 = vcombine.high %v510_v11, %v510_v11 }
 0x153   : > { %v511_v18 = vadd.f32 %v507_v17, %v475_v15 }
 0x154   : > { %518 = vrot.lane.b32.xlu0 %v515_v16, %s901_s30 }
 0x155   : > { %520 = vrot.lane.b32.xlu1 %v511_v18, %s901_s30 }
 0x158   : > { %516 = vrot.lane.b32.xlu0 %v510_v11, %s901_s30  ;;  %s1127_s30 = scalar_lea.hbm %s1173_s4, %s709_s23 }
 0x1c6   : > { %v519_v20 = vpop.permute.xlu0 %518 }
 0x1c7   : > { %v521_v21 = vpop.permute.xlu1 %520 }
 0x1c8   : > { %v523_v4 = vsel %vm479_vm4, %v519_v20, %v521_v21 }
 0x1c9   : > { %700 = vmatprep.subr.msk.mxu0 %vm271_vm6, %v523_v4 }
 0x1ca   : > { %v517_v24 = vpop.permute.xlu0 %516 }
 0x1cb   : > { %v522_v26 = vsel %vm479_vm4, %v517_v24, %v519_v20 }
 0x1cc   : > { %701 = vmatpush1.msk.msra.mxu0 %vm271_vm6, %v522_v26 }
 0x1cd   : > { %702 = vmatmul.mubr.msk.f32.vlgmr.msra.gmra.mrb[0].mxu0 %vm524_vm13, %v512_v25 }
 0x2a0   : > { %v598_v27 = vpop.f32.mrb[0].mxu0 }
 0x2a1   : > { %603 = vst [vmem:[%s213_s20] sm:$0xff] %v598_v27  ;;  %v600_v28 = vpop.f32.mrb[1].mxu0 }
 0x2a2   : > { %604 = vst [vmem:[%s213_s20 + $0x8] sm:$0xff] %v600_v28 }
 0x2a3   : > { %832 = shalt.err (!%p829_p4)
}
 0x2a4   : > { %s833_s7 = scalar_lea.hbm %s1127_s30, 256  ;;  %s837_s10 = scalar_lea.hbm %s1173_s4, 512 }
 0x2a5   : > { %p834_p5 = scmp.ne.s32.totalorder %s1127_s30, %s833_s7  ;;  %p838_p0 = scmp.lt.u32.totalorder %s1127_s30, %s1173_s4 }
 0x2a6   : > { %p839_p1 = scmp.lt.u32.totalorder %s837_s10, %s833_s7  ;;  %p841_p6 = scmp.lt.u32.totalorder %s833_s7, %s1127_s30 }
 0x2a7   : > { %p835_p8 = pnand %p834_p5, %p1182_p11 }
 0x2a8   : > { %p840_p3 = por %p839_p1, %p838_p0 }
 0x2a9   : > { %p836_p9 = pneg %p835_p8 }
 0x2aa   : > { %p842_p12 = por %p841_p6, %p840_p3 }
 0x2ac   : > { %p843_p13 = pnand %p842_p12, %p836_p9 }
 0x2ae   : > { %846 = shalt.err (!%p843_p13)
}
 0x2af   : > { %712 = dma.vmem_to_hbm [thread:$0]  (%p1182_p11), %s1122_s22, 256, %s1127_s30, %s606_s5  }
 0x2b0 PF: > { %s632_s26 = sand.u32 1, %s873_s15   ;;  %p1183_p7 = scmp.ne.s32.totalorder %s1178_s28, 0 }
 0x2b1   : > { %p1184_p10 = scmp.ge.s32.totalorder %s885_s18, 2  ;;  %s633_s20 = scalar_lea.sflag [#allocation5], %s632_s26 }
 0x2b3   : > { %p719_p2 = pnand %p1184_p10, %p1183_p7 }
 0x2b5   : > { %868 = dma.done.wait (!%p719_p2), %s633_s20, 256  }
 0x2b6   : > { %870 = vsyncadd (!%p719_p2), %s633_s20, 4294967040  ;;  %p17_p4 = scmp.ge.s32.totalorder %s962_s21, 4   ;;  %s1185_s15 = smov %s877_s16 }
 0x2b7   : > { %s1186_s16 = smov %s881_s17  ;;  %s1187_s17 = smov %s974_s24 }
 0x2b8   : > { %s1188_s18 = smov %s962_s21  ;;  %19 = sbr.rel (!%p17_p4) target bundleno = 5 (0x5), region = 82 }
 0x2bf   :  { %638 = vsyncpa [#allocation4], 1 }
 0x2c0   :  { %640 = vsyncpa [#allocation4 + $0x1], 1 }
 0x2c1   :  { %641 = vsyncpa [#allocation5], 1 }
 0x2c2   :  { %643 = vsyncpa [#allocation5 + $0x1], 1 }

</bundles_post_ra>
